<compile_context>
chip_gen: v7x
topology: tpu7x:2x2x1
jax: 0.10.0
libtpu: 0.0.40
codegen_flags: <defaults>
</compile_context>

<pallas_src>
import functools

import jax
import jax.numpy as jnp
from jax import lax
from jax.experimental import pallas as pl
from jax.experimental.pallas import tpu as pltpu


@functools.lru_cache(maxsize=None)
def _roll_matches_jnp_roll() -> bool:
    """One-time probe: does pltpu.roll follow jnp.roll's sign convention?

    jnp.roll(x, s, axis)[i] == x[(i - s) % n].  We only need the sign, so a
    tiny probe keeps the kernel correct regardless of the hardware/lowering
    convention, while still using the XLU rotate in the hot kernel.
    """
    def probe(x_ref, o_ref):
        o_ref[...] = pltpu.roll(x_ref[...], 1, 0)

    x = jnp.arange(8 * 128, dtype=jnp.float32).reshape(8, 128)
    y = pl.pallas_call(
        probe, out_shape=jax.ShapeDtypeStruct((8, 128), jnp.float32))(x)
    return bool(y[1, 0] == x[0, 0])


def _shift_up(x, k, K, *, use_roll, fwd):
    """xk[i, :] = x[(i + k) % K, :] along axis 0 (sublanes)."""
    if use_roll:
        # jnp.roll convention: shift by -k == K - k; opposite convention: k.
        return pltpu.roll(x, (K - k) if fwd else k, 0)
    # Fallback (static k only): guaranteed-semantics concat of two slices.
    return jnp.concatenate([x[k:, :], x[:k, :]], axis=0)


def _parc_kernel(x_ref, pe_ref, w_ref, b_ref, o_ref, *, K, fwd, use_roll,
                 unroll_taps):
    # Blocks: x/pe/w: (K, TL), b: (1, TL), o: (K, TL).   TL = lane tile.
    # Keep the input dtype (e.g. bf16) through the rolls; accumulate in f32.
    x = x_ref[...] + pe_ref[...]

    # Tap k = 0 also folds in the bias: no zeros init, no separate bias pass.
    w0 = w_ref[pl.ds(0, 1), :].astype(jnp.float32)          # (1, TL) row
    acc = x.astype(jnp.float32) * w0 + b_ref[...].astype(jnp.float32)

    def tap(k, acc):
        xk = _shift_up(x, k, K, use_roll=use_roll, fwd=fwd)   # XLU rotate
        wk = w_ref[pl.ds(k, 1), :].astype(jnp.float32)        # sublane bcast
        return acc + xk.astype(jnp.float32) * wk

    if unroll_taps:
        for k in range(1, K):                       # static shifts, small K
            acc = tap(k, acc)
    else:
        # Large K: bounded unroll keeps vreg live ranges short.
        acc = lax.fori_loop(1, K, tap, acc, unroll=4)

    o_ref[...] = acc.astype(o_ref.dtype)


def _pick_lane_tile(L, K, itemsize, max_block_bytes=1 << 20):
    """Largest lane tile that is a multiple of 128, divides L and keeps a
    (K, TL) block under max_block_bytes (so double-buffered in+out+params fit
    comfortably in VMEM on all TPU generations, incl. v7x's 64 MiB).  Falls
    back to the full extent (always legal) when L is not a multiple of 128."""
    if L % 128 != 0:
        return L
    best = 128
    tl = 128
    while tl <= L:
        if L % tl == 0 and K * tl * itemsize <= max_block_bytes:
            best = tl
        tl += 128
    return best


def parc_operator(x, pe, weight, bias, *, type_="H"):
    """Pallas implementation of ParC_operator.forward (use_pe=True).

    x:      (B, C, K, K)  NCHW, spatial size == global_kernel_size K
    pe:     (1, C, K, 1)  for 'H'  /  (1, C, 1, K) for 'W'
    weight: (C, 1, K, 1)  for 'H'  /  (C, 1, 1, K) for 'W'   (depthwise conv)
    bias:   (C,)
    """
    B, C, H, W = x.shape
    if type_ == "H":
        K, other = H, W
        # (B, H, C, W) -> (B, K, C*W): roll axis on sublanes, C*W on lanes.
        x_slab = jnp.transpose(x, (0, 2, 1, 3)).reshape(B, K, C * other)
    else:
        K, other = W, H
        x_slab = jnp.transpose(x, (0, 3, 1, 2)).reshape(B, K, C * other)
    L = C * other

    # Parameters pre-expanded to the (K, L) lane layout (layout plumbing only;
    # the PE add, circular conv and bias all stay inside the kernel).
    pe_kc = jnp.transpose(pe.reshape(C, K), (1, 0))                 # (K, C)
    w_kc = jnp.transpose(weight.reshape(C, K), (1, 0))              # (K, C)
    pe_slab = jnp.broadcast_to(pe_kc[:, :, None], (K, C, other)).reshape(K, L)
    w_slab = jnp.broadcast_to(w_kc[:, :, None], (K, C, other)).reshape(K, L)
    b_slab = jnp.broadcast_to(bias[:, None], (C, other)).reshape(1, L)

    itemsize = jnp.dtype(x.dtype).itemsize
    TL = _pick_lane_tile(L, K, itemsize)
    n_lane_tiles = L // TL

    use_roll = (K % 8 == 0)                 # sublane rotate on aligned extents
    unroll_taps = (K <= 32) or not use_roll

    kernel = functools.partial(
        _parc_kernel, K=K, fwd=_roll_matches_jnp_roll(), use_roll=use_roll,
        unroll_taps=unroll_taps)

    # Grid: lane tiles outer, batch inner (grid-invariant pe/w/b blocks are
    # reused across the inner batch steps); both axes fully parallel.
    out_slab = pl.pallas_call(
        kernel,
        out_shape=jax.ShapeDtypeStruct((B, K, L), x.dtype),
        grid=(n_lane_tiles, B),
        in_specs=[
            pl.BlockSpec((None, K, TL), lambda j, b: (b, 0, j)),   # x
            pl.BlockSpec((K, TL), lambda j, b: (0, j)),            # pe
            pl.BlockSpec((K, TL), lambda j, b: (0, j)),            # weights
            pl.BlockSpec((1, TL), lambda j, b: (0, j)),            # bias
        ],
        out_specs=pl.BlockSpec((None, K, TL), lambda j, b: (b, 0, j)),
        compiler_params=pltpu.CompilerParams(
            dimension_semantics=("parallel", "parallel"),
            vmem_limit_bytes=32 * 1024 * 1024,
        ),
    )(x_slab, pe_slab, w_slab, b_slab)

    if type_ == "H":
        return out_slab.reshape(B, K, C, other).transpose(0, 2, 1, 3)
    else:
        return out_slab.reshape(B, K, C, other).transpose(0, 2, 3, 1)


def parc_reference(x, pe, weight, bias, type_="H"):
    """Pure-JAX reference matching the PyTorch forward exactly."""
    B, C, H, W = x.shape
    xp = x + pe  # broadcast of pe.expand(1, C, K, K)
    w2 = weight.reshape(C, -1)
    if type_ == "H":
        K = H
        x_cat = jnp.concatenate([xp, xp[:, :, :-1, :]], axis=2)
        out = sum(w2[None, :, k, None, None] * x_cat[:, :, k:k + K, :]
                  for k in range(K))
    else:
        K = W
        x_cat = jnp.concatenate([xp, xp[:, :, :, :-1]], axis=3)
        out = sum(w2[None, :, k, None, None] * x_cat[:, :, :, k:k + K]
                  for k in range(K))
    return out + bias[None, :, None, None]


if __name__ == "__main__":
    B, C, K = 2, 4, 16  # batch, dim, global_kernel_size (spatial = K x K)

    key = jax.random.PRNGKey(0)
    kx, kw, kb, kpH, kpW = jax.random.split(key, 5)

    x = jax.random.normal(kx, (B, C, K, K), dtype=jnp.float32)

    # Synthetic parameters with the shapes implied by
    # nn.Conv2d(dim, dim, kernel_size, groups=dim) and the pe nn.Parameter.
    w_H = jax.random.normal(kw, (C, 1, K, 1), dtype=jnp.float32) * (1.0 / K)
    b_H = jax.random.normal(kb, (C,), dtype=jnp.float32) * 0.1
    pe_H = jax.random.normal(kpH, (1, C, K, 1), dtype=jnp.float32) * 0.02

    w_W = jnp.transpose(w_H, (0, 1, 3, 2))          # (C, 1, 1, K)
    b_W = b_H
    pe_W = jax.random.normal(kpW, (1, C, 1, K), dtype=jnp.float32) * 0.02

    ok = True
    for type_, w, b, pe in (("H", w_H, b_H, pe_H), ("W", w_W, b_W, pe_W)):
        out = jax.block_until_ready(parc_operator(x, pe, w, b, type_=type_))
        ref = parc_reference(x, pe, w, b, type_=type_)
        if not jnp.allclose(out, ref, atol=1e-5, rtol=1e-5):
            ok = False
            print(f"MISMATCH for type {type_}: "
                  f"max abs err {float(jnp.max(jnp.abs(out - ref)))}")

    if ok:
        print("KERNEL_OK")
</pallas_src>

<mosaic_0001>
module attributes {stable_mosaic.version = 11 : i64} {
  func.func @probe(%arg0: memref<8x128xf32, #tpu.memory_space<vmem>>, %arg1: memref<8x128xf32, #tpu.memory_space<vmem>>) attributes {dimension_semantics = [], scalar_prefetch = 0 : i64, scratch_operands = 0 : i64, tpu.core_type = #tpu.core_type<tc>} {
    %c0 = arith.constant 0 : index
    %c0_0 = arith.constant 0 : index
    %0 = vector.load %arg0[%c0, %c0_0] : memref<8x128xf32, #tpu.memory_space<vmem>>, vector<8x128xf32>
    %c1_i32 = arith.constant 1 : i32
    %1 = tpu.dynamic_rotate %0 by %c1_i32 dim 0 : vector<8x128xf32>, i32 -> vector<8x128xf32>
    %c0_1 = arith.constant 0 : index
    %c0_2 = arith.constant 0 : index
    %2 = vector.load %arg1[%c0_1, %c0_2] : memref<8x128xf32, #tpu.memory_space<vmem>>, vector<8x128xf32>
    tpu.vector_store %arg1[%c0_1, %c0_2], %1 {strides = array<i32>} : memref<8x128xf32, #tpu.memory_space<vmem>>, vector<8x128xf32>,
    return
  }
}

</mosaic_0001>

<bundles_post_ra>
// kernel: tpu_custom_call.1
= control target key start
LH: loop header
LB: loop body
LE: loop exit
PB: predicated region body
PF: predicated region fallthrough
CT: control target
= control target key end

     0   :  { %6 = vsyncpa [#allocation3], 0  ;;  %s125_s0 = inlined_call_operand.hbm [shape: f32[8,128], index: 0, kind: input, shape index: {}]   ;;  %s126_s1 = inlined_call_operand.hbm [shape: f32[8,128], index: 1, kind: output, shape index: {}]  }
   0x1   :  { %7 = vsyncpa [#allocation4], 0  ;;  %s89_s6 = smov [#allocation2]   ;;  %s41_s10 = scalar_lea.hbm %s125_s0, 128 }
   0x2   :  { %s14_s7 = sshll.u32 %s89_s6, 4  ;;  %p42_p0 = scmp.ne.s32.totalorder %s125_s0, %s41_s10  ;;  %s15_s7 = int_to_ptr.vmem [resolvable:$true] %s14_s7 }
   0x3   :  { %p45_p1 = scmp.lt.u32.totalorder %s41_s10, %s125_s0 }
   0x5   :  { %p47_p2 = pnand %p45_p1, %p42_p0 }
   0x7   :  { %50 = shalt.err (!%p47_p2)
}
   0x8   :  { %s51_s15 = scalar_lea.vmem %s15_s7, 128  ;;  %p56_p4 = scmp.lt.s32.totalorder %s15_s7, %s15_s7 }
   0x9   :  { %p52_p3 = scmp.ne.s32.totalorder %s15_s7, %s51_s15  ;;  %p57_p5 = scmp.lt.s32.totalorder %s51_s15, %s51_s15 }
   0xb   :  { %p58_p6 = por %p57_p5, %p56_p4 }
   0xd   :  { %p59_p7 = pnand %p58_p6, %p52_p3 }
   0xf   :  { %62 = shalt.err (!%p59_p7)
}
  0x10   :  { %17 = dma.hbm_to_vmem [thread:$0]  %s125_s0, 128, %s15_s7, [#allocation3]  }
  0x11   :  { %85 = dma.done.wait [#allocation3], 128  }
  0x12   :  { %86 = vsyncadd [#allocation3], 4294967168  ;;  %s90_s18 = smov [#allocation5]   ;;  %v21_v0 = vld [vmem:[#allocation2] sm:$0xff] }
  0x13   :  { %s30_s19 = sshll.u32 %s90_s18, 4  ;;  %v22_v1 = vrot.slane %v21_v0, 7  ;;  %s31_s19 = int_to_ptr.vmem [resolvable:$true] %s30_s19 }
  0x14   :  { %s63_s20 = scalar_lea.vmem %s31_s19, 128  ;;  %p68_p9 = scmp.lt.s32.totalorder %s31_s19, %s31_s19 }
  0x15   :  { %23 = vst [vmem:[#allocation5] sm:$0xff] %v22_v1  ;;  %p64_p8 = scmp.ne.s32.totalorder %s31_s19, %s63_s20  ;;  %p69_p10 = scmp.lt.s32.totalorder %s63_s20, %s63_s20 }
  0x17   :  { %p70_p11 = por %p69_p10, %p68_p9 }
  0x19   :  { %p71_p12 = pnand %p70_p11, %p64_p8 }
  0x1b   :  { %74 = shalt.err (!%p71_p12)
}
  0x1c   :  { %s75_s23 = scalar_lea.hbm %s126_s1, 128 }
  0x1d   :  { %p76_p13 = scmp.ne.s32.totalorder %s126_s1, %s75_s23  ;;  %p79_p0 = scmp.lt.u32.totalorder %s75_s23, %s126_s1 }
  0x1f   :  { %p81_p1 = pnand %p79_p0, %p76_p13 }
  0x21   :  { %84 = shalt.err (!%p81_p1)
}
  0x22   :  { %33 = dma.vmem_to_hbm [thread:$0]  %s31_s19, 128, %s126_s1, [#allocation4]  }
  0x23   :  { %87 = dma.done.wait [#allocation4], 128  }
  0x24   :  { %88 = vsyncadd [#allocation4], 4294967168 }
  0x25   :  { %37 = vsyncpa [#allocation3], 1 }
  0x26   :  { %38 = vsyncpa [#allocation4], 1 }

</bundles_post_ra>
